<compile_context>
chip_gen: v7x
topology: tpu7x:2x2x1
jax: 0.10.0
libtpu: 0.0.40
codegen_flags: <defaults>
</compile_context>

<pallas_src>
import functools

import jax
import jax.numpy as jnp
from jax import lax
from jax.experimental import pallas as pl
from jax.experimental.pallas import tpu as pltpu


def _round_up(x, m):
    return (x + m - 1) // m * m


def _pick_vmem_limit(vmem_need):
    """Per-generation VMEM scoped limit with headroom (64 MiB on v7x vs 128 MiB)."""
    phys = None
    try:
        phys = getattr(pltpu.get_tpu_info(), "vmem_capacity_bytes", None)
    except Exception:  # TODO(synk): older jax without get_tpu_info
        phys = None
    if not phys or phys <= 0:
        phys = 64 * 1024 * 1024  # conservative: assume v7x per-TC VMEM
    cap = min(int(phys * 0.6), 96 * 1024 * 1024)
    return int(min(max(vmem_need, 16 * 1024 * 1024), cap))


def _focal_loss_kernel(pred_ref, tgt_ref, out_ref, *, gamma, n_total, need_mask):
    pred = pred_ref[...]                               # (C, TILE) log-probs, input dtype
    tgt = tgt_ref[...]                                 # (1, TILE) int32
    c, tile = pred.shape

    # One-hot gather along the class (sublane) axis:  ce_j = -pred[target_j, j]
    cls_ids = lax.broadcasted_iota(jnp.int32, (c, 1), 0)   # tiny; broadcast inside ==
    onehot = cls_ids == tgt                                 # (C, TILE)
    gathered = jnp.where(onehot, pred, 0.0)                 # stays in input dtype (exact)
    ce = -(jnp.sum(gathered, axis=0, keepdims=True).astype(jnp.float32))  # (1, TILE)

    if need_mask:
        # Ragged last tile: columns >= n_total carry garbage -> zero their ce.
        # Lane-dense (1, TILE) compare + select: ~TILE/128 vregs, near-free.
        col = pl.program_id(0) * tile + lax.broadcasted_iota(jnp.int32, (1, tile), 1)
        ce = jnp.where(col < n_total, ce, 0.0)

    # focal = (1 - exp(-ce))**gamma * ce   (alpha and 1/denom folded outside)
    p = jnp.exp(-ce)
    one_minus = jnp.maximum(1.0 - p, 0.0)

    g = float(gamma)
    if g == 0.0:
        mod = None
    elif g == 1.0:
        mod = one_minus
    elif g.is_integer() and 0.0 < g <= 8.0:
        mod = one_minus
        for _ in range(int(g) - 1):
            mod = mod * one_minus
    else:
        # TODO(synk): non-integer gamma falls back to pow (exp/log path).
        mod = jnp.power(one_minus, g)

    focal = ce if mod is None else mod * ce                 # (1, TILE)

    # One lane-reduce per (large) tile; write a lane-dense (8, 128) partial block.
    partial = jnp.sum(focal, keepdims=True)                 # (1, 1)
    out_ref[...] = jnp.broadcast_to(partial, out_ref.shape)


def focal_loss(pred, target, trans_feat=None, weight=None, *,
               alpha=1.0, gamma=2.0, reduction="mean", tile_n=None):
    """Pallas TPU focal loss. pred: (N, C) log-probs, target: (N,) ints."""
    del trans_feat  # unused by the reference forward
    assert weight is None, "weight path not implemented"  # TODO(synk): weight
    n, c = pred.shape
    if reduction not in ("mean", "sum"):
        raise NotImplementedError("reduction='none' not supported")  # TODO(synk)

    # Classes-on-sublanes / samples-on-lanes layout.
    # TODO(synk): upstream log_softmax could emit (C, N) directly and skip this transpose.
    pred_t = jnp.transpose(pred)                       # (C, N)
    tgt2 = target.astype(jnp.int32).reshape(1, n)      # (1, N), lane-dense

    # Samples ride the 128-wide lane axis -> tile must be a multiple of 128.
    _MAX_TILE = 32768
    if tile_n is None:
        # At least 2 tiles when possible (both TensorCores on v7x); big tiles
        # to amortize the ~0.35us per-grid-step pipeline overhead.
        tile_n = min(_round_up(pl.cdiv(n, 2), 128), _MAX_TILE)
    else:
        tile_n = min(max(128, _round_up(int(tile_n), 128)), _MAX_TILE)
    num_tiles = pl.cdiv(n, tile_n)
    need_mask = (n % tile_n) != 0

    kernel = functools.partial(_focal_loss_kernel,
                               gamma=float(gamma),
                               n_total=int(n),
                               need_mask=bool(need_mask))

    itemsize = jnp.dtype(pred.dtype).itemsize
    c_pad = _round_up(c, max(8, 32 // itemsize))       # sublane padding of the (C, TILE) block
    # Double-buffered inputs + small output blocks + headroom.
    vmem_need = (2 * (c_pad * tile_n * itemsize + 8 * tile_n * 4)
                 + 2 * 8 * 128 * 4 + (1 << 20))
    vmem_limit = _pick_vmem_limit(vmem_need)

    partials = pl.pallas_call(
        kernel,
        out_shape=jax.ShapeDtypeStruct((num_tiles * 8, 128), jnp.float32),
        grid_spec=pltpu.PrefetchScalarGridSpec(
            num_scalar_prefetch=0,
            grid=(num_tiles,),
            in_specs=[
                pl.BlockSpec((c, tile_n), lambda i: (0, i)),
                pl.BlockSpec((1, tile_n), lambda i: (0, i)),
            ],
            out_specs=pl.BlockSpec((8, 128), lambda i: (i, 0)),
        ),
        compiler_params=pltpu.CompilerParams(
            dimension_semantics=("parallel",),
            vmem_limit_bytes=vmem_limit),
        cost_estimate=pl.CostEstimate(
            flops=n * (3 * c + 10),
            transcendentals=n,
            bytes_accessed=n * (c * itemsize + 4) + num_tiles * 8 * 128 * 4),
    )(pred_t, tgt2)

    per_tile = partials.reshape(num_tiles, 8, 128)[:, 0, 0]       # (num_tiles,)
    total = jnp.sum(per_tile) * jnp.float32(alpha)
    if reduction == "mean":
        total = total / jnp.float32(n)
    return total


def _reference(pred, target, alpha=1.0, gamma=2.0):
    ce = -jnp.take_along_axis(pred, target[:, None].astype(jnp.int32),
                              axis=-1)[:, 0]
    p = jnp.exp(-ce)
    return jnp.mean(alpha * (1.0 - p) ** gamma * ce)


if __name__ == "__main__":
    # Shapes consistent with pointnet_sem_seg: pred = (B*Npts, num_classes)
    B, NPTS, NUM_CLASSES = 2, 128, 13
    N = B * NPTS

    key = jax.random.PRNGKey(0)
    k_logits, k_tgt, k_tf = jax.random.split(key, 3)

    logits = jax.random.normal(k_logits, (N, NUM_CLASSES), dtype=jnp.float32)
    pred = jax.nn.log_softmax(logits, axis=-1)          # log-probabilities
    target = jax.random.randint(k_tgt, (N,), 0, NUM_CLASSES, dtype=jnp.int32)
    trans_feat = jax.random.normal(k_tf, (B, 64, 64), dtype=jnp.float32)  # unused

    # Main path: default tiling -> 2 tiles of 128 (exercises the parallel grid).
    loss = focal_loss(pred, target, trans_feat)
    loss = jax.block_until_ready(loss)
    ref = _reference(pred, target)
    assert jnp.allclose(loss, ref, rtol=1e-5, atol=1e-6), (loss, ref)

    # Ragged path: N not divisible by the tile -> in-kernel lane-dense mask.
    n2 = 200
    loss2 = focal_loss(pred[:n2], target[:n2], trans_feat)
    loss2 = jax.block_until_ready(loss2)
    ref2 = _reference(pred[:n2], target[:n2])
    assert jnp.allclose(loss2, ref2, rtol=1e-5, atol=1e-6), (loss2, ref2)

    print("KERNEL_OK")
</pallas_src>

<mosaic_0001>
module attributes {stable_mosaic.version = 11 : i64} {
  func.func @_focal_loss_kernel(%arg0: i32, %arg1: memref<13x128xf32, #tpu.memory_space<vmem>>, %arg2: memref<1x128xi32, #tpu.memory_space<vmem>>, %arg3: memref<8x128xf32, #tpu.memory_space<vmem>>) attributes {dimension_semantics = [#tpu.dimension_semantics<parallel>], iteration_bounds = array<i64: 2>, scalar_prefetch = 0 : i64, scratch_operands = 0 : i64, tpu.core_type = #tpu.core_type<tc>, window_params = [{transform_indices = @transform_0, window_bounds = array<i64: 13, 128>}, {transform_indices = @transform_1, window_bounds = array<i64: 1, 128>}, {transform_indices = @transform_2, window_bounds = array<i64: 8, 128>}]} {
    %c0 = arith.constant 0 : index
    %c0_0 = arith.constant 0 : index
    %0 = vector.load %arg1[%c0, %c0_0] : memref<13x128xf32, #tpu.memory_space<vmem>>, vector<13x128xf32>
    %c0_1 = arith.constant 0 : index
    %c0_2 = arith.constant 0 : index
    %1 = vector.load %arg2[%c0_1, %c0_2] : memref<1x128xi32, #tpu.memory_space<vmem>>, vector<1x128xi32>
    %2 = tpu.iota {dimensions = array<i32: 0>} : vector<13x1xi32>
    %3 = vector.broadcast %2 : vector<13x1xi32> to vector<13x128xi32>
    %4 = vector.broadcast %1 : vector<1x128xi32> to vector<13x128xi32>
    %5 = arith.cmpi eq, %3, %4 : vector<13x128xi32>
    %cst = arith.constant 0.000000e+00 : f32
    %6 = vector.broadcast %cst : f32 to vector<13x128xf32>
    %7 = arith.select %5, %0, %6 : vector<13x128xi1>, vector<13x128xf32>
    %cst_3 = arith.constant dense<0.000000e+00> : vector<128xf32>
    %8 = vector.multi_reduction <add>, %7, %cst_3 [0] : vector<13x128xf32> to vector<128xf32>
    %9 = vector.shape_cast %8 : vector<128xf32> to vector<1x128xf32>
    %cst_4 = arith.constant 0.000000e+00 : f32
    %10 = vector.broadcast %cst_4 : f32 to vector<1x128xf32>
    %11 = arith.subf %10, %9 : vector<1x128xf32>
    %cst_5 = arith.constant 0.000000e+00 : f32
    %12 = vector.broadcast %cst_5 : f32 to vector<1x128xf32>
    %13 = arith.subf %12, %11 : vector<1x128xf32>
    %14 = math.exp %13 : vector<1x128xf32>
    %cst_6 = arith.constant 1.000000e+00 : f32
    %15 = vector.broadcast %cst_6 : f32 to vector<1x128xf32>
    %16 = arith.subf %15, %14 : vector<1x128xf32>
    %cst_7 = arith.constant 0.000000e+00 : f32
    %17 = vector.broadcast %cst_7 : f32 to vector<1x128xf32>
    %18 = arith.maximumf %16, %17 : vector<1x128xf32>
    %19 = arith.mulf %18, %18 : vector<1x128xf32>
    %20 = arith.mulf %19, %11 : vector<1x128xf32>
    %21 = vector.shape_cast %20 : vector<1x128xf32> to vector<1x1x128xf32>
    %cst_8 = arith.constant dense<0.000000e+00> : vector<1xf32>
    %22 = vector.multi_reduction <add>, %21, %cst_8 [1, 2] : vector<1x1x128xf32> to vector<1xf32>
    %23 = vector.shape_cast %22 : vector<1xf32> to vector<1x1x1xf32>
    %24 = vector.extract %23[0, 0, 0] : f32 from vector<1x1x1xf32>
    %25 = vector.broadcast %24 : f32 to vector<1x1xf32>
    %26 = vector.shape_cast %25 : vector<1x1xf32> to vector<1x1xf32>
    %27 = vector.broadcast %26 : vector<1x1xf32> to vector<8x128xf32>
    %c0_9 = arith.constant 0 : index
    %c0_10 = arith.constant 0 : index
    %28 = vector.load %arg3[%c0_9, %c0_10] : memref<8x128xf32, #tpu.memory_space<vmem>>, vector<8x128xf32>
    tpu.vector_store %arg3[%c0_9, %c0_10], %27 {strides = array<i32>} : memref<8x128xf32, #tpu.memory_space<vmem>>, vector<8x128xf32>,
    return
  }
  func.func @transform_0(%arg0: i32) -> (i32, i32) {
    %c0_i32 = arith.constant 0 : i32
    %c0_i32_0 = arith.constant 0 : i32
    return %c0_i32, %arg0 : i32, i32
  }
  func.func @transform_1(%arg0: i32) -> (i32, i32) {
    %c0_i32 = arith.constant 0 : i32
    %c0_i32_0 = arith.constant 0 : i32
    return %c0_i32, %arg0 : i32, i32
  }
  func.func @transform_2(%arg0: i32) -> (i32, i32) {
    %c0_i32 = arith.constant 0 : i32
    %c0_i32_0 = arith.constant 0 : i32
    return %arg0, %c0_i32 : i32, i32
  }
}

</mosaic_0001>

<bundles_post_ra>
// kernel: tpu_custom_call.1
= control target key start
LH: loop header
LB: loop body
LE: loop exit
PB: predicated region body
PF: predicated region fallthrough
CT: control target
= control target key end

     0   :  { %7 = vsyncpa [#allocation3], 0  ;;  %s664_s0 = inlined_call_operand.hbm [shape: f32[13,256], index: 0, kind: input, shape index: {}]   ;;  %s665_s1 = inlined_call_operand.vmem [shape: s32[1,256], index: 1, kind: input, shape index: {}]   ;;  %s666_s2 = inlined_call_operand.hbm [shape: f32[16,128], index: 2, kind: output, shape index: {}]  }
   0x1   :  { %9 = vsyncpa [#allocation3 + $0x1], 0 }
   0x2   :  { %10 = vsyncpa [#allocation4], 0 }
   0x3   :  { %12 = vsyncpa [#allocation4 + $0x1], 0  ;;  %s496_s9 = smov 0   ;;  %s498_s10 = smov 0  }
   0x4   :  { %s500_s11 = smov 0   ;;  %s502_s12 = smov 0  }
   0x5 LB: > { %s517_s13 = sadd.s32 4294967295, %s474_s12   ;;  %s312_s14 = sadd.s32 4294967294, %s474_s12   ;;  %s474_s12 = sphi %s502_s12, %s680_s12   ;;  %s470_s11 = sphi %s500_s11, %s679_s11   ;;  %s466_s10 = sphi %s498_s10, %s678_s10   ;;  %s462_s9 = sphi %s496_s9, %s677_s9  }
   0x6   : > { %s521_s15 = sadd.s32 1, %s474_s12   ;;  %s25_s16 = sadd.s32 1, %s470_s11 }
   0x7   : > { %s22_s17 = ssub.s32 %s474_s12, %s521_s15  ;;  %p32_p0 = scmp.ne.s32.totalorder %s470_s11, %s466_s10 }
   0x8   : > { %p23_p1 = scmp.eq.s32.totalorder %s22_s17, 0  ;;  %p33_p2 = scmp.eq.s32.totalorder %s474_s12, 0 }
   0x9   : > { %p38_p3 = scmp.ne.s32.totalorder %s466_s10, %s462_s9  ;;  %p39_p4 = scmp.eq.s32.totalorder %s517_s13, 0 }
   0xa   : > { %s533_s18 = scalar_select %p23_p1, %s470_s11, %s25_s16  }
   0xb   : > { %p535_p5 = por %p33_p2, %p32_p0  ;;  %p539_p6 = por %p39_p4, %p38_p3 }
   0xc   : > { %p88_p7 = scmp.eq.s32.totalorder %s517_s13, 1  ;;  %p94_p8 = scmp.eq.s32.totalorder %s312_s14, 1 }
   0xd   : > { %p339_p10 = scmp.lt.s32.totalorder %s474_s12, 2  ;;  %s114_s23 = sand.u32 1, %s470_s11  }
   0xe   : > { %p546_p11 = por %p88_p7, %p32_p0  ;;  %p550_p12 = por %p94_p8, %p38_p3 }
   0xf   : > { %s316_s24 = sshll.u32 %s474_s12, 7  ;;  %s315_s25 = sshll.u32 %s114_s23, 4 }
  0x10   : > { %s670_s21 = scalar_select %p546_p11, 1, 0 }
  0x11   : > { %s671_s22 = scalar_select %p550_p12, 1, 0 }
  0x12   : > { %s559_s28 = scalar_lea.hbm %s664_s0, %s316_s24  ;;  %s118_s29 = scalar_lea.vmem [#allocation2], %s315_s25 }
  0x13   : > { %s124_s30 = sshll.u32 %s118_s29, 4  ;;  %p563_p13 = pnand %p339_p10, %p535_p5  ;;  %s567_s30 = int_to_ptr.vmem [resolvable:$true] %s124_s30 }
  0x14   : > { %s570_s4 = scalar_lea.sflag [#allocation3], %s114_s23  ;;  %s378_s5 = scalar_lea.hbm %s559_s28, 256 }
  0x15   : > { %p379_p1 = scmp.ne.s32.totalorder %s559_s28, %s378_s5  ;;  %p380_p2 = pneg %p563_p13 }
  0x16   : > { %s383_s8 = scalar_lea.hbm %s664_s0, 512  ;;  %p384_p5 = scmp.lt.u32.totalorder %s559_s28, %s664_s0 }
  0x17   : > { %p381_p3 = pnand %p380_p2, %p379_p1  ;;  %p385_p7 = scmp.lt.u32.totalorder %s383_s8, %s378_s5 }
  0x18   : > { %p387_p10 = scmp.lt.u32.totalorder %s378_s5, %s559_s28 }
  0x19   : > { %p382_p4 = pneg %p381_p3  ;;  %p386_p8 = por %p385_p7, %p384_p5 }
  0x1b   : > { %p388_p9 = por %p387_p10, %p386_p8 }
  0x1d   : > { %p389_p0 = pnand %p388_p9, %p382_p4 }
  0x1f   : > { %392 = shalt.err (!%p389_p0)
}
  0x20   : > { %s393_s17 = scalar_lea.vmem %s567_s30, 256  ;;  %s476_s19 = smov [#allocation2]  }
  0x21   : > { %p394_p1 = scmp.ne.s32.totalorder %s567_s30, %s393_s17  ;;  %s398_s23 = sshll.u32 %s476_s19, 4  ;;  %s399_s23 = int_to_ptr.vmem [resolvable:$false] %s398_s23 }
  0x22   : > { %s400_s24 = scalar_lea.vmem %s399_s23, 512  ;;  %p401_p11 = scmp.lt.s32.totalorder %s567_s30, %s399_s23 }
  0x23   : > { %p396_p3 = pnand %p394_p1, %p380_p2  ;;  %p402_p5 = scmp.lt.s32.totalorder %s400_s24, %s393_s17 }
  0x25   : > { %p397_p12 = pneg %p396_p3  ;;  %p403_p7 = por %p402_p5, %p401_p11 }
  0x27   : > { %p404_p8 = pnand %p403_p7, %p397_p12 }
  0x29   : > { %407 = shalt.err (!%p404_p8)
}
  0x2a   : > { %s477_s25 = smov 256   ;;  %s478_s26 = smov 128  }
  0x2b   : > { %s479_s27 = smov 8   ;;  %p138_p9 = scmp.lt.s32.totalorder %s474_s12, 3 }
  0x2c   : > { %334 = dma.hbm_to_vmem [thread:$0]  (!%p563_p13), %s559_s28, 256, %s567_s30, %s570_s4, %s477_s25, %s478_s26, %s479_s27  }
  0x2d   : > { %p673_p0 = scmp.ge.s32.totalorder %s474_s12, 1 }
  0x2f   : > { %p139_p2 = pnand %p673_p0, %p138_p9 }
  0x30   : > { %s602_s29 = sand.u32 (!%p139_p2), 1, %s466_s10  }
  0x31   : > { %142 = sbr.rel (%p139_p2) target bundleno = 325 (0x145), region = 28  ;;  %s318_s5 = sshll.u32 (!%p139_p2), %s602_s29, 4 }
  0x32   : > { %s145_s6 = scalar_lea.sflag (!%p139_p2), [#allocation3], %s602_s29  ;;  %s148_s7 = scalar_lea.vmem (!%p139_p2), [#allocation2], %s318_s5 }
  0x38   : > { %453 = dma.done.wait (%p539_p6), %s145_s6, 256  }
  0x39   : > { %455 = vsyncadd (%p539_p6), %s145_s6, 4294967040  ;;  %p172_p11 = scmp.lt.s32.totalorder %s517_s13, 1  ;;  %v178_v0 = vlaneseq  ;;  %v175_v3 = vld [vmem:[%s148_s7] sm:$0xff]  ;;  %v176_v4 = vld [vmem:[%s148_s7 + $0x8] sm:$0x1f]  ;;  %vm189_vm0 = vcmask 1044480  }
  0x3a   : > { %vm206_vm3 = vcmask 1040384   ;;  %s319_s20 = sshll.u32 %s602_s29, 3  ;;  %s322_s16 = sshll.u32 %s517_s13, 7 }
  0x3b   : > { %s173_s28 = scalar_select %p172_p11, %s517_s13, 1  ;;  %v179_v1 = vshrl.u32 %v178_v0, 7 }
  0x3c   : > { %s171_s8 = scalar_lea.vmem [#allocation5], %s319_s20  ;;  %s622_s24 = scalar_lea.hbm %s666_s2, %s322_s16 }
  0x3d   : > { %s174_s4 = scalar_lea.vmem %s665_s1, %s173_s28  ;;  %v180_v2 = vadd.s32 8, %v179_v1  ;;  %s233_s14 = sshll.u32 %s171_s8, 4  ;;  %s617_s14 = int_to_ptr.vmem [resolvable:$true] %s233_s14 }
  0x3e   : > { %v320_v5 = vld [vmem:[%s174_s4] ss:$0 sm:$0xff]  ;;  %s220_s25 = scalar_lea.sflag [#allocation4], %s602_s29  ;;  %s408_s26 = scalar_lea.vmem %s617_s14, 128 }
  0x3f   : > { %vm185_vm1 = vcmp.eq.s32.totalorder %v179_v1, %v320_v5  ;;  %vm186_vm2 = vcmp.eq.s32.totalorder %v180_v2, %v320_v5  ;;  %p409_p6 = scmp.ne.s32.totalorder %s617_s14, %s408_s26  ;;  %p674_p12 = scmp.ne.s32.totalorder %s670_s21, 0 }
  0x40   : > { %v187_v6 = vsel %vm185_vm1, %v175_v3, 0.0  ;;  %v188_v7 = vsel %vm186_vm2, %v176_v4, 0.0  ;;  %s480_s13 = smov [#allocation5]  }
  0x41   : > { %v190_v8 = vsel %vm189_vm0, %v188_v7, 0.0  ;;  %p410_p13 = pnand %p409_p6, %p674_p12  ;;  %s412_s27 = sshll.u32 %s480_s13, 4  ;;  %s413_s27 = int_to_ptr.vmem [resolvable:$false] %s412_s27 }
  0x42   : > { %v191_v9 = vadd.f32 %v190_v8, %v187_v6  ;;  %s414_s5 = scalar_lea.vmem %s413_s27, 256  ;;  %p415_p10 = scmp.lt.s32.totalorder %s617_s14, %s413_s27 }
  0x43   : > { %p411_p4 = pneg %p410_p13  ;;  %p416_p1 = scmp.lt.s32.totalorder %s414_s5, %s408_s26 }
  0x44   : > { %v192_v10 = vrot.slane %v191_v9, 4 }
  0x45   : > { %p417_p3 = por %p416_p1, %p415_p10 }
  0x46   : > { %v193_v11 = vadd.f32 %v192_v10, %v191_v9 }
  0x47   : > { %p418_p5 = pnand %p417_p3, %p411_p4 }
  0x48   : > { %v194_v12 = vrot.slane %v193_v11, 2 }
  0x4a   : > { %v195_v13 = vadd.f32 %v194_v12, %v193_v11 }
  0x4c   : > { %v196_v14 = vrot.slane %v195_v13, 1 }
  0x4e   : > { %v197_v15 = vadd.f32 %v196_v14, %v195_v13 }
  0x50   : > { %v198_v16 = vsub.f32 0.0, %v197_v15 }
  0x52   : > { %v199_v17 = vsub.f32 0.0, %v198_v16 }
  0x54   : > { %v200_v18 = vmul.f32 1.442695, %v199_v17 }
  0x56   : > { %376 = vpow2.f32 %v200_v18 }
  0x60   : > { %v377_v19 = vpop.eup %376 }
  0x61   : > { %v202_v20 = vsub.f32 1.0, %v377_v19 }
  0x63   : > { %v203_v21 = vmax.f32 %v202_v20, 0.0 }
  0x65   : > { %v204_v22 = vmul.f32 %v203_v21, %v203_v21 }
  0x67   : > { %v205_v23 = vmul.f32 %v204_v22, %v198_v16 }
  0x69   : > { %v207_v24 = vsel %vm206_vm3, %v205_v23, 0.0 }
  0x6a   : > { %208 = vadd.xlane.f32.xlu0 %v207_v24 }
  0xf7   : > { %v209_v25 = vpop.xlane.xlu0 %208 }
  0xf8   : > { %v210_v26 = vrot.slane %v209_v25, 4 }
  0xfa   : > { %v211_v27 = vadd.f32 %v210_v26, %v209_v25 }
  0xfc   : > { %v212_v28 = vrot.slane %v211_v27, 2 }
  0xfe   : > { %v213_v29 = vadd.f32 %v212_v28, %v211_v27 }
 0x100   : > { %v214_v30 = vrot.slane %v213_v29, 1 }
 0x102   : > { %v215_v31 = vadd.f32 %v214_v30, %v213_v29 }
 0x104   : > { %325 = vpush %v215_v31 }
 0x135   : > { %s326_s17 = spop %325 }
 0x136   : > { %v217_v32 = vstv %s326_s17 }
 0x137   : > { %218 = vst [vmem:[%s171_s8] sm:$0xff] %v217_v32 }
 0x138   : > { %421 = shalt.err (!%p418_p5)
}
 0x139   : > { %s422_s29 = scalar_lea.hbm %s622_s24, 128  ;;  %s426_s28 = scalar_lea.hbm %s666_s2, 256 }
 0x13a   : > { %p423_p7 = scmp.ne.s32.totalorder %s622_s24, %s422_s29  ;;  %p427_p0 = scmp.lt.u32.totalorder %s622_s24, %s666_s2 }
 0x13b   : > { %p428_p2 = scmp.lt.u32.totalorder %s426_s28, %s422_s29  ;;  %p430_p6 = scmp.lt.u32.totalorder %s422_s29, %s622_s24 }
 0x13c   : > { %p424_p8 = pnand %p423_p7, %p674_p12 }
 0x13d   : > { %p429_p11 = por %p428_p2, %p427_p0 }
 0x13e   : > { %p425_p9 = pneg %p424_p8 }
 0x13f   : > { %p431_p13 = por %p430_p6, %p429_p11 }
 0x141   : > { %p432_p4 = pnand %p431_p13, %p425_p9 }
 0x143   : > { %435 = shalt.err (!%p432_p4)
}
 0x144   : > { %329 = dma.vmem_to_hbm [thread:$0]  (%p674_p12), %s617_s14, 128, %s622_s24, %s220_s25  }
 0x145 PF: > { %s245_s4 = sand.u32 1, %s462_s9   ;;  %p675_p10 = scmp.ne.s32.totalorder %s671_s22, 0 }
 0x146   : > { %p676_p1 = scmp.ge.s32.totalorder %s474_s12, 2  ;;  %s246_s20 = scalar_lea.sflag [#allocation4], %s245_s4 }
 0x148   : > { %p336_p3 = pnand %p676_p1, %p675_p10 }
 0x14a   : > { %457 = dma.done.wait (!%p336_p3), %s246_s20, 128  }
 0x14b   : > { %459 = vsyncadd (!%p336_p3), %s246_s20, 4294967168  ;;  %p15_p5 = scmp.ge.s32.totalorder %s521_s15, 4   ;;  %s677_s9 = smov %s466_s10 }
 0x14c   : > { %s678_s10 = smov %s470_s11  ;;  %s679_s11 = smov %s533_s18 }
 0x14d   : > { %s680_s12 = smov %s521_s15  ;;  %17 = sbr.rel (!%p15_p5) target bundleno = 5 (0x5), region = 76 }
 0x154   :  { %251 = vsyncpa [#allocation3], 1 }
 0x155   :  { %253 = vsyncpa [#allocation3 + $0x1], 1 }
 0x156   :  { %254 = vsyncpa [#allocation4], 1 }
 0x157   :  { %256 = vsyncpa [#allocation4 + $0x1], 1 }

</bundles_post_ra>
